<compile_context>
chip_gen: v6e
topology: v6e:2x2x1
jax: 0.10.0
libtpu: 0.0.40
codegen_flags: <defaults>
</compile_context>

<pallas_src>
import functools

import jax
import jax.numpy as jnp
from jax import lax
from jax.experimental import pallas as pl
from jax.experimental.pallas import tpu as pltpu


def _round_up(a, b):
    return (a + b - 1) // b * b


@functools.lru_cache(maxsize=None)
def _vmem_capacity_bytes():
    try:
        return int(pltpu.get_tpu_info().vmem_capacity_bytes)
    except Exception:  # pragma: no cover - conservative fallback (v7x per-TC)
        return 64 << 20


def _vmem_budget_bytes():
    # Tile-sizing budget: <=40% of per-core VMEM capacity (generation-aware).
    return int(0.4 * _vmem_capacity_bytes())


def _pick_tk(m, k, itemsize, budget_bytes, resident_f32_tiles):
    """k-tile size: multiple of 128, >=2048 (>=4KiB/row DMA in bf16), <=8192,
    aiming for >=4 pipelined grid steps, within the VMEM budget."""
    k128 = _round_up(k, 128)
    resident = resident_f32_tiles * m * m * 4
    input_budget = max(budget_bytes - resident, 2 * m * 128 * itemsize)
    tk_budget = max(128, (input_budget // (2 * m * itemsize)) // 128 * 128)
    tk = min(tk_budget, 8192, max(2048, _round_up(pl.cdiv(k128, 4), 128)))
    return int(min(max(tk, 128), k128))


def _compiler_params(m, tk, itemsize, resident_f32_tiles):
    cap = _vmem_capacity_bytes()
    # Double-buffered (m, tk) input tiles + resident f32 (m, m) blocks
    # (output / target incl. 2nd pipelining buffer, accumulator) + slack.
    need = 2 * m * tk * itemsize + resident_f32_tiles * m * m * 4
    limit = int(min(max(need + (8 << 20), 32 << 20), cap // 2))
    return pltpu.CompilerParams(
        dimension_semantics=("arbitrary",),  # k is a reduction axis
        vmem_limit_bytes=limit,
    )


def _prep_feats(x, stream_dtype):
    """(B,C,H,W) -> (m, k) streaming view; optional cast to the stream dtype
    (bf16 by default) so the bandwidth-bound kernel reads half the bytes."""
    b, c, h, w = x.shape
    m, k = b * c, h * w
    f = x.reshape(m, k)  # contiguous reshape: no HBM copy
    if stream_dtype is not None and f.dtype != jnp.dtype(stream_dtype):
        f = f.astype(stream_dtype)
    return f, m, k


def _masked_tile(f_ref, k_total, tk):
    """Load the current (m, tk) tile; zero the tail columns of the final
    (partial) k block so unspecified bytes past the array edge are ignored."""
    f = f_ref[...]
    if k_total % tk != 0:
        kk = pl.program_id(0)
        col = lax.broadcasted_iota(jnp.int32, f.shape, 1)
        f = jnp.where(col < (k_total - kk * tk), f, 0)
    return f


# ---------------------------------------------------------------------------
# Kernel 1: gram matrix  G = (F @ F.T) / (B*C*H*W), k tiled with accumulator.
# ---------------------------------------------------------------------------
def _gram_kernel(f_ref, g_ref, acc_ref, *, inv_denom, k_total, tk):
    kk = pl.program_id(0)

    @pl.when(kk == 0)
    def _init():
        acc_ref[...] = jnp.zeros_like(acc_ref)

    f = _masked_tile(f_ref, k_total, tk)  # streamed dtype feeds the MXU
    acc_ref[...] += lax.dot_general(
        f, f,
        dimension_numbers=(((1,), (1,)), ((), ())),  # F @ F.T, no transpose
        preferred_element_type=jnp.float32,
    )

    @pl.when(kk == pl.num_programs(0) - 1)
    def _finalize():
        g_ref[...] = acc_ref[...] * inv_denom


def gram_matrix(x, stream_dtype=jnp.bfloat16, tk=None):
    """x: (B, C, H, W) -> gram matrix (B*C, B*C), float32."""
    b, c, h, w = x.shape
    feats, m, k = _prep_feats(x, stream_dtype)
    itemsize = jnp.dtype(feats.dtype).itemsize
    if tk is None:
        tk = _pick_tk(m, k, itemsize, _vmem_budget_bytes(), resident_f32_tiles=3)
    inv_denom = 1.0 / float(b * c * h * w)

    return pl.pallas_call(
        functools.partial(_gram_kernel, inv_denom=inv_denom, k_total=k, tk=tk),
        out_shape=jax.ShapeDtypeStruct((m, m), jnp.float32),
        grid=(pl.cdiv(k, tk),),
        in_specs=[pl.BlockSpec((m, tk), lambda kk: (0, kk))],
        out_specs=pl.BlockSpec((m, m), lambda kk: (0, 0)),
        scratch_shapes=[pltpu.VMEM((m, m), jnp.float32)],
        compiler_params=_compiler_params(m, tk, itemsize, 3),
    )(feats)


# ---------------------------------------------------------------------------
# Kernel 2: style loss  loss = mean((gram(input) - target_gram)**2)
# ---------------------------------------------------------------------------
def _style_loss_kernel(f_ref, t_ref, o_ref, acc_ref, *, inv_denom, inv_n,
                       k_total, tk):
    kk = pl.program_id(0)

    @pl.when(kk == 0)
    def _init():
        acc_ref[...] = jnp.zeros_like(acc_ref)

    f = _masked_tile(f_ref, k_total, tk)
    acc_ref[...] += lax.dot_general(
        f, f,
        dimension_numbers=(((1,), (1,)), ((), ())),
        preferred_element_type=jnp.float32,
    )

    @pl.when(kk == pl.num_programs(0) - 1)
    def _finalize():
        d = acc_ref[...] * inv_denom - t_ref[...]
        o_ref[0, 0] = jnp.sum(d * d) * inv_n


def style_loss_forward(x, target_gram, stream_dtype=jnp.bfloat16, tk=None):
    """x: (B, C, H, W), target_gram: (B*C, B*C) -> scalar float32 loss."""
    b, c, h, w = x.shape
    feats, m, k = _prep_feats(x, stream_dtype)
    itemsize = jnp.dtype(feats.dtype).itemsize
    if tk is None:
        tk = _pick_tk(m, k, itemsize, _vmem_budget_bytes(), resident_f32_tiles=4)
    tgt = target_gram.astype(jnp.float32)

    inv_denom = 1.0 / float(b * c * h * w)
    inv_n = 1.0 / float(m * m)  # mse_loss 'mean' over the gram matrix

    out = pl.pallas_call(
        functools.partial(_style_loss_kernel, inv_denom=inv_denom, inv_n=inv_n,
                          k_total=k, tk=tk),
        out_shape=jax.ShapeDtypeStruct((1, 1), jnp.float32),
        grid=(pl.cdiv(k, tk),),
        in_specs=[
            pl.BlockSpec((m, tk), lambda kk: (0, kk)),
            pl.BlockSpec((m, m), lambda kk: (0, 0)),
        ],
        out_specs=pl.BlockSpec(memory_space=pltpu.MemorySpace.SMEM),
        scratch_shapes=[pltpu.VMEM((m, m), jnp.float32)],
        compiler_params=_compiler_params(m, tk, itemsize, 4),
    )(feats, tgt)
    return out[0, 0]


# ---------------------------------------------------------------------------
# Pure-JAX references (correctness checks only)
# ---------------------------------------------------------------------------
def _ref_gram(x, stream_dtype=None):
    b, c, h, w = x.shape
    f = x.reshape(b * c, h * w)
    if stream_dtype is not None:
        f = f.astype(stream_dtype)
    f = f.astype(jnp.float32)
    g = jnp.dot(f, f.T, precision=jax.lax.Precision.HIGHEST)
    return g / float(b * c * h * w)


def _ref_loss(x, target, stream_dtype=None):
    g = _ref_gram(x, stream_dtype)
    t = _ref_gram(target, stream_dtype)
    return jnp.mean((g - t) ** 2)


if __name__ == "__main__":
    key = jax.random.PRNGKey(0)
    k_tgt, k_in, k_rem = jax.random.split(key, 3)

    B, C, H, W = 2, 4, 16, 16
    # Deterministic synthetic "feature maps" (stand-ins for VGG19 activations).
    target = jax.random.normal(k_tgt, (B, C, H, W), dtype=jnp.float32)
    x = jax.random.normal(k_in, (B, C, H, W), dtype=jnp.float32)

    # Default path: bf16 HBM streaming, f32 MXU accumulation.
    tg = gram_matrix(target)
    loss = jax.block_until_ready(style_loss_forward(x, tg))
    ref_tg = _ref_gram(target, jnp.bfloat16)
    ref_loss = _ref_loss(x, target, jnp.bfloat16)
    assert jnp.allclose(tg, ref_tg, rtol=3e-3, atol=1e-5), (tg, ref_tg)
    assert jnp.allclose(loss, ref_loss, rtol=3e-3, atol=1e-6), (loss, ref_loss)

    # Explicit f32 streaming path.
    tg32 = gram_matrix(target, stream_dtype=jnp.float32)
    loss32 = jax.block_until_ready(
        style_loss_forward(x, tg32, stream_dtype=jnp.float32))
    assert jnp.allclose(tg32, _ref_gram(target), rtol=3e-3, atol=1e-5)
    assert jnp.allclose(loss32, _ref_loss(x, target), rtol=3e-3, atol=1e-6)

    # Multi-step accumulator + in-kernel k-tail mask (k=324 not a multiple of
    # tk=128 -> 3 grid steps, last one partially masked).
    xr = jax.random.normal(k_rem, (1, 8, 18, 18), dtype=jnp.float32)
    g_rem = jax.block_until_ready(
        gram_matrix(xr, stream_dtype=jnp.float32, tk=128))
    assert jnp.allclose(g_rem, _ref_gram(xr), rtol=3e-3, atol=1e-5)

    print("KERNEL_OK")
</pallas_src>

<mosaic_0001>
module attributes {stable_mosaic.version = 11 : i64} {
  func.func @_gram_kernel(%arg0: i32, %arg1: memref<8x256xbf16, #tpu.memory_space<vmem>>, %arg2: memref<8x8xf32, #tpu.memory_space<vmem>>, %arg3: memref<8x8xf32, #tpu.memory_space<vmem>>) attributes {dimension_semantics = [#tpu.dimension_semantics<arbitrary>], iteration_bounds = array<i64: 1>, scalar_prefetch = 0 : i64, scratch_operands = 1 : i64, tpu.core_type = #tpu.core_type<tc>, window_params = [{transform_indices = @transform_0, window_bounds = array<i64: 8, 256>}, {pipeline_mode = #tpu.pipeline_mode<synchronous>, transform_indices = @transform_1, window_bounds = array<i64: 8, 8>}]} {
    %c0_i32 = arith.constant 0 : i32
    %0 = arith.cmpi eq, %arg0, %c0_i32 : i32
    %1 = arith.extui %0 : i1 to i32
    %c0_i32_0 = arith.constant 0 : i32
    %2 = arith.cmpi ne, %1, %c0_i32_0 : i32
    scf.if %2 {
      %cst_8 = arith.constant 0.000000e+00 : f32
      %11 = vector.broadcast %cst_8 : f32 to vector<8x8xf32>
      %c0_9 = arith.constant 0 : index
      %c0_10 = arith.constant 0 : index
      %12 = vector.load %arg3[%c0_9, %c0_10] : memref<8x8xf32, #tpu.memory_space<vmem>>, vector<8x8xf32>
      tpu.vector_store %arg3[%c0_9, %c0_10], %11 {strides = array<i32>} : memref<8x8xf32, #tpu.memory_space<vmem>>, vector<8x8xf32>,
    } else {
    }
    %c0 = arith.constant 0 : index
    %c0_1 = arith.constant 0 : index
    %3 = vector.load %arg1[%c0, %c0_1] : memref<8x256xbf16, #tpu.memory_space<vmem>>, vector<8x256xbf16>
    %c0_2 = arith.constant 0 : index
    %c0_3 = arith.constant 0 : index
    %4 = vector.load %arg3[%c0_2, %c0_3] : memref<8x8xf32, #tpu.memory_space<vmem>>, vector<8x8xf32>
    %cst = arith.constant dense<0.000000e+00> : vector<8x8xf32>
    %5 = tpu.matmul %3, %3, %cst {dimension_numbers = #tpu.dot_dimension_numbers<[1], [1], [0], [0], [0, 0, 1, 0], [], []>} : vector<8x256xbf16>, vector<8x256xbf16>, vector<8x8xf32> -> vector<8x8xf32>
    %6 = arith.addf %4, %5 : vector<8x8xf32>
    %c0_4 = arith.constant 0 : index
    %c0_5 = arith.constant 0 : index
    %7 = vector.load %arg3[%c0_4, %c0_5] : memref<8x8xf32, #tpu.memory_space<vmem>>, vector<8x8xf32>
    tpu.vector_store %arg3[%c0_4, %c0_5], %6 {strides = array<i32>} : memref<8x8xf32, #tpu.memory_space<vmem>>, vector<8x8xf32>,
    %c0_i32_6 = arith.constant 0 : i32
    %8 = arith.cmpi eq, %arg0, %c0_i32_6 : i32
    %9 = arith.extui %8 : i1 to i32
    %c0_i32_7 = arith.constant 0 : i32
    %10 = arith.cmpi ne, %9, %c0_i32_7 : i32
    scf.if %10 {
      %c0_8 = arith.constant 0 : index
      %c0_9 = arith.constant 0 : index
      %11 = vector.load %arg3[%c0_8, %c0_9] : memref<8x8xf32, #tpu.memory_space<vmem>>, vector<8x8xf32>
      %cst_10 = arith.constant 4.8828125E-4 : f32
      %12 = vector.broadcast %cst_10 : f32 to vector<8x8xf32>
      %13 = arith.mulf %11, %12 : vector<8x8xf32>
      %c0_11 = arith.constant 0 : index
      %c0_12 = arith.constant 0 : index
      %14 = vector.load %arg2[%c0_11, %c0_12] : memref<8x8xf32, #tpu.memory_space<vmem>>, vector<8x8xf32>
      tpu.vector_store %arg2[%c0_11, %c0_12], %13 {strides = array<i32>} : memref<8x8xf32, #tpu.memory_space<vmem>>, vector<8x8xf32>,
    } else {
    }
    return
  }
  func.func @transform_0(%arg0: i32) -> (i32, i32) {
    %c0_i32 = arith.constant 0 : i32
    %c0_i32_0 = arith.constant 0 : i32
    return %c0_i32, %arg0 : i32, i32
  }
  func.func @transform_1(%arg0: i32) -> (i32, i32) {
    %c0_i32 = arith.constant 0 : i32
    %c0_i32_0 = arith.constant 0 : i32
    %c0_i32_1 = arith.constant 0 : i32
    return %c0_i32, %c0_i32_0 : i32, i32
  }
}

</mosaic_0001>

<bundles_post_ra>
// kernel: tpu_custom_call.1
= control target key start
LH: loop header
LB: loop body
LE: loop exit
PB: predicated region body
PF: predicated region fallthrough
CT: control target
= control target key end

     0   :  { %6 = vsyncpa [#allocation4], 0  ;;  %s174_s0 = inlined_call_operand.hbm [shape: bf16[8,256], index: 0, kind: input, shape index: {}]   ;;  %s175_s1 = inlined_call_operand.hbm [shape: f32[8,8], index: 1, kind: output, shape index: {}]  }
   0x1   :  { %7 = vsyncpa [#allocation5], 0  ;;  %s152_s6 = smov [#allocation3]  }
   0x2   :  { %s14_s7 = sshll.u32 %s152_s6, 4  ;;  %s15_s7 = int_to_ptr.vmem [resolvable:$true] %s14_s7 }
   0x3   :  { %s116_s8 = scalar_lea.vmem %s15_s7, 128  ;;  %p121_p1 = scmp.lt.s32.totalorder %s15_s7, %s15_s7 }
   0x4   :  { %p117_p0 = scmp.ne.s32.totalorder %s15_s7, %s116_s8  ;;  %p122_p2 = scmp.lt.s32.totalorder %s116_s8, %s116_s8 }
   0x6   :  { %p123_p3 = por %p122_p2, %p121_p1 }
   0x8   :  { %p124_p4 = pnand %p123_p3, %p117_p0 }
   0xa   :  { %127 = shalt.err (!%p124_p4)
}
   0xb   :  { %17 = dma.hbm_to_vmem [thread:$0]  %s174_s0, 128, %s15_s7, [#allocation4]  }
   0xc   :  { %148 = dma.done.wait [#allocation4], 128  }
   0xd   :  { %149 = vsyncadd [#allocation4], 4294967168  ;;  %vm26_vm0 = vcmask 64512   ;;  %v153_v0 = vmov 0.0   ;;  %v28_v1 = vld [vmem:[#allocation3] sm:$0xff]  ;;  %s154_s0 = smov [#allocation6]  }
   0xe   :  { %27 = vst.msk [vmem:[#allocation2] sm:$0xff] %vm26_vm0, %v153_v0  ;;  %v102_v2 = vcombine.high %v28_v1, %v28_v1  ;;  %v101_v3 = vcombine.low %v28_v1, %v28_v1  ;;  %s92_s11 = sshll.u32 %s154_s0, 4  ;;  %s93_s11 = int_to_ptr.vmem [resolvable:$true] %s92_s11 }
   0xf   :  { %s128_s12 = scalar_lea.vmem %s93_s11, 128  ;;  %p133_p6 = scmp.lt.s32.totalorder %s93_s11, %s93_s11 }
  0x10   :  { %51 = vmatprep.subr.bf16.mxu0 %v102_v2  ;;  %69 = vmatprep.mubr.bf16.mxu0 %v102_v2  ;;  %p129_p5 = scmp.ne.s32.totalorder %s93_s11, %s128_s12  ;;  %p134_p7 = scmp.lt.s32.totalorder %s128_s12, %s128_s12 }
  0x11   :  { %52 = vmatpush1.bf16.xpose.msra.mxu0 %v101_v3 }
  0x12   :  { %p135_p8 = por %p134_p7, %p133_p6 }
  0x14   :  { %p136_p9 = pnand %p135_p8, %p129_p5 }
  0x15   :  { %v29_v4 = vld [vmem:[#allocation2] sm:$0xff] }
  0x18   :  { %70 = vmatmul.mubr.bf16.vlgmr.msra.gmra.mxu0 %v101_v3 }
  0xd8   :  { %v71_v5 = vpop.f32.mrf.mxu0 }
  0xd9   :  { %v77_v6 = vadd.f32 %v71_v5, %v29_v4 }
  0xda   :  { %v73_v7 = vpop.f32.mrf.mxu0 }
  0xdb   :  { %79 = vst.msk [vmem:[#allocation2] sm:$0xff] %vm26_vm0, %v77_v6 }
  0xdc   :  { %v74_v8 = vpop.f32.mrf.mxu0 }
  0xde   :  { %v75_v9 = vpop.f32.mrf.mxu0 }
  0xe2   :  { %v83_v10 = vld [vmem:[#allocation2] sm:$0xff] }
  0xe3   :  { %v84_v11 = vmul.f32 0.00048828125, %v83_v10 }
  0xe5   :  { %85 = vst.msk [vmem:[#allocation6] sm:$0xff] %vm26_vm0, %v84_v11 }
  0xe6   :  { %139 = shalt.err (!%p136_p9)
}
  0xe7   :  { %95 = dma.vmem_to_hbm [thread:$0]  %s93_s11, 128, %s175_s1, [#allocation5]  }
  0xe8   :  { %150 = dma.done.wait [#allocation5], 128  }
  0xe9   :  { %151 = vsyncadd [#allocation5], 4294967168 }
  0xea   :  { %99 = vsyncpa [#allocation4], 1 }
  0xeb   :  { %100 = vsyncpa [#allocation5], 1 }

</bundles_post_ra>
